<compile_context>
chip_gen: v6e
topology: v6e:2x2x1
jax: 0.10.0
libtpu: 0.0.40
codegen_flags: <defaults>
</compile_context>

<pallas_src>
import functools

import jax
import jax.numpy as jnp
from jax.experimental import pallas as pl
from jax.experimental.pallas import tpu as pltpu


def _round_up(a, m):
    return -(-a // m) * m


def _vmem_limit_bytes():
    """Scoped-VMEM request: generous on 128 MiB parts, headroom on 64 MiB v7x."""
    phys = 64 << 20  # conservative default (v7x per-TensorCore VMEM)
    try:
        phys = int(pltpu.get_tpu_info().vmem_capacity_bytes)
    except Exception:
        pass
    return max(32 << 20, min(phys - (12 << 20), 100 << 20))


def _row_tile(nrows, bytes_per_row, budget_bytes=6 << 20):
    """Multiple-of-8 row tile targeting ~budget_bytes per block.  The grid uses
    pl.cdiv, so a ragged last block is fine; tiny row counts use full extent."""
    if nrows <= 8:
        return nrows
    t = max(8, (budget_bytes // max(bytes_per_row, 1)) // 8 * 8)
    return min(t, (nrows // 8) * 8)


def _build_circular(x_val, xw_ref, *, k, pad, L, Lp, Lp_pad):
    """Build the period-Lp circular buffer for raw rows x_val (rows, L) inside
    a zeroed (rows, Lp_pad) VMEM frame:

      lanes [0, Lp)                 = ConstantPad1d((pad, pad), 0)(x)
      lanes [Lp_pad - (k-1), ...)   = last k-1 values of the padded signal

    so that pltpu.roll(buf, j) reproduces x_padded[(t - j) mod Lp] for every
    output lane t < Lp.  Requires Lp_pad == Lp or Lp_pad - Lp >= k - 1
    (guaranteed by the caller's slack bump loop).
    """
    xw_ref[...] = jnp.zeros(xw_ref.shape, xw_ref.dtype)
    xw_ref[:, :L] = x_val.astype(xw_ref.dtype)
    xw = xw_ref[...]
    # Shift x to lane offset `pad`; lanes in front are filled by the zero tail.
    xp = pltpu.roll(xw, shift=pad, axis=1) if pad > 0 else xw
    if k > 1 and Lp_pad > Lp:
        # Plant the circular wrap: the last k-1 lanes of the frame must hold
        # the last k-1 values of x_padded (x tail followed by `pad` zeros).
        plant = pltpu.roll(xw, shift=Lp_pad - L - pad, axis=1)
        lane = jax.lax.broadcasted_iota(jnp.int32, xp.shape, 1)
        xp = jnp.where(lane >= Lp_pad - (k - 1), plant, xp)
    return xp


def _row_kernel(x_ref, w_ref, o_ref, xw_ref, *, k, pad, L, Lp, Lp_pad):
    """One distinct weight row per signal row (B == Cout, flattened rows).

    x_ref: (tile_r, L)  raw rows   w_ref: (tile_r, k) taps
    o_ref: (tile_r, Lp) final-shape output     xw_ref: (tile_r, Lp_pad) scratch
    """
    xp = _build_circular(x_ref[...], xw_ref, k=k, pad=pad, L=L, Lp=Lp, Lp_pad=Lp_pad)
    w = w_ref[...]
    acc = w[:, 0:1] * xp                        # tap j = 0, no shift
    for j in range(1, k):                       # k is tiny & static -> unrolled
        acc = acc + w[:, j:j + 1] * pltpu.roll(xp, shift=j, axis=1)
    o_ref[...] = jnp.maximum(acc[:, :Lp], 0.0).astype(o_ref.dtype)


def _bcast_kernel(x_ref, w_ref, o_ref, xw_ref, *, k, pad, L, Lp, Lp_pad, tb, hoist):
    """torch broadcast path (B == 1): one resident x block, TB weight rows.

    x_ref: (tile_c, L)        w_ref: (tb, tile_c, k)
    o_ref: (tb, tile_c, Lp)   xw_ref: (tile_c, Lp_pad) scratch
    """
    xp = _build_circular(x_ref[...], xw_ref, k=k, pad=pad, L=L, Lp=Lp, Lp_pad=Lp_pad)
    if hoist:  # hoist the k rolled copies once; reuse across the tb output rows
        shifted = [xp] + [pltpu.roll(xp, shift=j, axis=1) for j in range(1, k)]
    w = w_ref[...]
    for t in range(tb):                         # tb static -> unrolled
        acc = w[t, :, 0:1] * xp
        for j in range(1, k):
            sj = shifted[j] if hoist else pltpu.roll(xp, shift=j, axis=1)
            acc = acc + w[t, :, j:j + 1] * sj
        o_ref[t] = jnp.maximum(acc[:, :Lp], 0.0).astype(o_ref.dtype)


def fft_conv_layer_forward(x, kernel):
    """Pallas forward of FFTConvolutionalLayer.

    x:      (B, Cin, L)     float32
    kernel: (Cout, Cin, k)  float32
    returns (max(B, Cout), Cin, L + 2*(k//2)) float32  (torch broadcast shape)
    """
    B, Cin, L = x.shape
    Cout, Cin_k, k = kernel.shape
    assert Cin == Cin_k, "in_channels mismatch"
    # torch broadcasting of (B, Cin, Lp) * (Cout, Cin, Lp)
    assert B == Cout or B == 1 or Cout == 1, (
        "FFTConvolutionalLayer (as written in torch) needs B == Cout, B == 1 "
        "or Cout == 1")
    pad = k // 2
    Lp = L + 2 * pad
    # Lane-dense internal frame; keep >= k-1 slack lanes for the wrap plant
    # (loop the bump so arbitrarily large k stays correct).
    Lp_pad = _round_up(Lp, 128)
    while Lp_pad > Lp and Lp_pad - Lp < k - 1:
        Lp_pad += 128
    Bo = max(B, Cout)
    vmem_limit = _vmem_limit_bytes()

    if B == 1 and Cout > 1:
        # Broadcast path: single x row set reused across Cout output channels.
        x2 = x.reshape(Cin, L)
        if Cin <= 8:
            tile_c = Cin
        else:
            tile_c = min(max(8, ((2 << 20) // (Lp_pad * 4)) // 8 * 8),
                         (Cin // 8) * 8)
        tb = max(1, (4 << 20) // max(tile_c * Lp * 4, 1))
        tb = int(min(tb, Cout, 32))              # cap the static unroll
        hoist = k * tile_c * Lp_pad * 4 <= (4 << 20)
        kern = functools.partial(_bcast_kernel, k=k, pad=pad, L=L, Lp=Lp,
                                 Lp_pad=Lp_pad, tb=tb, hoist=hoist)
        out = pl.pallas_call(
            kern,
            out_shape=jax.ShapeDtypeStruct((Cout, Cin, Lp), x.dtype),
            grid=(pl.cdiv(Cin, tile_c), pl.cdiv(Cout, tb)),
            in_specs=[
                # x index_map ignores bo -> block stays resident across bo.
                pl.BlockSpec((tile_c, L), lambda ci, bo: (ci, 0)),
                pl.BlockSpec((tb, tile_c, k), lambda ci, bo: (bo, ci, 0)),
            ],
            out_specs=pl.BlockSpec((tb, tile_c, Lp), lambda ci, bo: (bo, ci, 0)),
            scratch_shapes=[pltpu.VMEM((tile_c, Lp_pad), jnp.float32)],
            compiler_params=pltpu.CompilerParams(
                dimension_semantics=("parallel", "parallel"),
                vmem_limit_bytes=vmem_limit,
            ),
        )(x2, kernel)
        return out

    # B == Cout (or Cout == 1): every output row pairs one x row with one
    # weight row -> flatten to Bo*Cin independent rows and stream row tiles.
    if Cout == 1 and B > 1:
        kernel = jnp.broadcast_to(kernel, (B, Cin, k))   # tiny (B*Cin*k) copy
    R = Bo * Cin
    x_rows = x.reshape(R, L)
    w_rows = kernel.reshape(R, k)
    tile_r = _row_tile(R, 4 * (L + Lp + Lp_pad))
    kern = functools.partial(_row_kernel, k=k, pad=pad, L=L, Lp=Lp, Lp_pad=Lp_pad)
    out = pl.pallas_call(
        kern,
        out_shape=jax.ShapeDtypeStruct((R, Lp), x.dtype),
        grid=(pl.cdiv(R, tile_r),),
        in_specs=[
            pl.BlockSpec((tile_r, L), lambda i: (i, 0)),
            pl.BlockSpec((tile_r, k), lambda i: (i, 0)),
        ],
        out_specs=pl.BlockSpec((tile_r, Lp), lambda i: (i, 0)),
        scratch_shapes=[pltpu.VMEM((tile_r, Lp_pad), jnp.float32)],
        compiler_params=pltpu.CompilerParams(
            dimension_semantics=("parallel",),
            vmem_limit_bytes=vmem_limit,
        ),
    )(x_rows, w_rows)
    return out.reshape(Bo, Cin, Lp)


def _reference_fft_forward(x, kernel):
    """Pure-JAX transcription of the torch forward (FFT path), for checking."""
    k = kernel.shape[-1]
    pad = k // 2
    x_padded = jnp.pad(x, ((0, 0), (0, 0), (pad, pad)))
    Lp = x_padded.shape[-1]
    x_fft = jnp.fft.fft(x_padded, axis=-1)
    kpad = jnp.pad(kernel, ((0, 0), (0, 0), (0, Lp - k)))
    kernel_fft = jnp.fft.fft(kpad, axis=-1)
    convolved = jnp.fft.ifft(x_fft * kernel_fft, axis=-1).real
    return jax.nn.relu(convolved)


if __name__ == "__main__":
    # Small shapes consistent with the module: batch=2, in_channels=4,
    # out_channels=2 (broadcast-compatible with batch), seq=16, kernel_size=3.
    B, Cin, Cout, L, K = 2, 4, 2, 16, 3

    key = jax.random.PRNGKey(0)
    kx, kw, kx1 = jax.random.split(key, 3)
    x = jax.random.normal(kx, (B, Cin, L), dtype=jnp.float32)
    weight = jax.random.normal(kw, (Cout, Cin, K), dtype=jnp.float32)

    # Main path: B == Cout (flattened rows).
    out = jax.block_until_ready(fft_conv_layer_forward(x, weight))
    ref = _reference_fft_forward(x, weight)
    assert out.shape == ref.shape, (out.shape, ref.shape)
    assert jnp.allclose(out, ref, rtol=1e-3, atol=2e-3), "mismatch vs FFT reference"

    # torch-broadcast path (B=1, out_channels>1): resident x block, TB weight rows.
    x1 = jax.random.normal(kx1, (1, Cin, L), dtype=jnp.float32)
    out1 = jax.block_until_ready(fft_conv_layer_forward(x1, weight))
    ref1 = _reference_fft_forward(x1, weight)
    assert out1.shape == ref1.shape, (out1.shape, ref1.shape)
    assert jnp.allclose(out1, ref1, rtol=1e-3, atol=2e-3), "mismatch (B=1 broadcast)"

    # torch-broadcast path (out_channels=1, batch>1): tiny weight broadcast.
    w1 = weight[:1]
    out2 = jax.block_until_ready(fft_conv_layer_forward(x, w1))
    ref2 = _reference_fft_forward(x, w1)
    assert out2.shape == ref2.shape, (out2.shape, ref2.shape)
    assert jnp.allclose(out2, ref2, rtol=1e-3, atol=2e-3), "mismatch (Cout=1 broadcast)"

    print("KERNEL_OK")
</pallas_src>

<mosaic_0001>
module attributes {stable_mosaic.version = 11 : i64} {
  func.func @_row_kernel(%arg0: i32, %arg1: memref<8x16xf32, #tpu.memory_space<vmem>>, %arg2: memref<8x3xf32, #tpu.memory_space<vmem>>, %arg3: memref<8x18xf32, #tpu.memory_space<vmem>>, %arg4: memref<8x128xf32, #tpu.memory_space<vmem>>) attributes {dimension_semantics = [#tpu.dimension_semantics<parallel>], iteration_bounds = array<i64: 1>, scalar_prefetch = 0 : i64, scratch_operands = 1 : i64, tpu.core_type = #tpu.core_type<tc>, window_params = [{transform_indices = @transform_0, window_bounds = array<i64: 8, 16>}, {transform_indices = @transform_1, window_bounds = array<i64: 8, 3>}, {transform_indices = @transform_2, window_bounds = array<i64: 8, 18>}]} {
    %c0 = arith.constant 0 : index
    %c0_0 = arith.constant 0 : index
    %0 = vector.load %arg1[%c0, %c0_0] : memref<8x16xf32, #tpu.memory_space<vmem>>, vector<8x16xf32>
    %cst = arith.constant 0.000000e+00 : f32
    %1 = vector.broadcast %cst : f32 to vector<8x128xf32>
    %c0_1 = arith.constant 0 : index
    %c0_2 = arith.constant 0 : index
    %2 = vector.load %arg4[%c0_1, %c0_2] : memref<8x128xf32, #tpu.memory_space<vmem>>, vector<8x128xf32>
    tpu.vector_store %arg4[%c0_1, %c0_2], %1 {strides = array<i32>} : memref<8x128xf32, #tpu.memory_space<vmem>>, vector<8x128xf32>,
    %c0_3 = arith.constant 0 : index
    %c0_4 = arith.constant 0 : index
    %3 = vector.load %arg4[%c0_3, %c0_4] : memref<8x128xf32, #tpu.memory_space<vmem>>, vector<8x16xf32>
    tpu.vector_store %arg4[%c0_3, %c0_4], %0 {strides = array<i32>} : memref<8x128xf32, #tpu.memory_space<vmem>>, vector<8x16xf32>,
    %c0_5 = arith.constant 0 : index
    %c0_6 = arith.constant 0 : index
    %4 = vector.load %arg4[%c0_5, %c0_6] : memref<8x128xf32, #tpu.memory_space<vmem>>, vector<8x128xf32>
    %c1_i32 = arith.constant 1 : i32
    %5 = tpu.dynamic_rotate %4 by %c1_i32 dim 1 : vector<8x128xf32>, i32 -> vector<8x128xf32>
    %c111_i32 = arith.constant 111 : i32
    %6 = tpu.dynamic_rotate %4 by %c111_i32 dim 1 : vector<8x128xf32>, i32 -> vector<8x128xf32>
    %7 = tpu.iota {dimensions = array<i32: 1>} : vector<8x128xi32>
    %c126_i32 = arith.constant 126 : i32
    %8 = vector.broadcast %c126_i32 : i32 to vector<8x128xi32>
    %9 = arith.cmpi sge, %7, %8 : vector<8x128xi32>
    %10 = arith.select %9, %6, %5 : vector<8x128xi1>, vector<8x128xf32>
    %c0_7 = arith.constant 0 : index
    %c0_8 = arith.constant 0 : index
    %11 = vector.load %arg2[%c0_7, %c0_8] : memref<8x3xf32, #tpu.memory_space<vmem>>, vector<8x3xf32>
    %12 = vector.extract_strided_slice %11 {offsets = [0, 0], sizes = [8, 1], strides = [1, 1]} : vector<8x3xf32> to vector<8x1xf32>
    %13 = vector.broadcast %12 : vector<8x1xf32> to vector<8x128xf32>
    %14 = arith.mulf %13, %10 : vector<8x128xf32>
    %15 = vector.extract_strided_slice %11 {offsets = [0, 1], sizes = [8, 1], strides = [1, 1]} : vector<8x3xf32> to vector<8x1xf32>
    %c1_i32_9 = arith.constant 1 : i32
    %16 = tpu.dynamic_rotate %10 by %c1_i32_9 dim 1 : vector<8x128xf32>, i32 -> vector<8x128xf32>
    %17 = vector.broadcast %15 : vector<8x1xf32> to vector<8x128xf32>
    %18 = arith.mulf %17, %16 : vector<8x128xf32>
    %19 = arith.addf %14, %18 : vector<8x128xf32>
    %20 = vector.extract_strided_slice %11 {offsets = [0, 2], sizes = [8, 1], strides = [1, 1]} : vector<8x3xf32> to vector<8x1xf32>
    %c2_i32 = arith.constant 2 : i32
    %21 = tpu.dynamic_rotate %10 by %c2_i32 dim 1 : vector<8x128xf32>, i32 -> vector<8x128xf32>
    %22 = vector.broadcast %20 : vector<8x1xf32> to vector<8x128xf32>
    %23 = arith.mulf %22, %21 : vector<8x128xf32>
    %24 = arith.addf %19, %23 : vector<8x128xf32>
    %25 = vector.extract_strided_slice %24 {offsets = [0, 0], sizes = [8, 18], strides = [1, 1]} : vector<8x128xf32> to vector<8x18xf32>
    %cst_10 = arith.constant 0.000000e+00 : f32
    %26 = vector.broadcast %cst_10 : f32 to vector<8x18xf32>
    %27 = arith.maximumf %25, %26 : vector<8x18xf32>
    %c0_11 = arith.constant 0 : index
    %c0_12 = arith.constant 0 : index
    %28 = vector.load %arg3[%c0_11, %c0_12] : memref<8x18xf32, #tpu.memory_space<vmem>>, vector<8x18xf32>
    tpu.vector_store %arg3[%c0_11, %c0_12], %27 {strides = array<i32>} : memref<8x18xf32, #tpu.memory_space<vmem>>, vector<8x18xf32>,
    return
  }
  func.func @transform_0(%arg0: i32) -> (i32, i32) {
    %c0_i32 = arith.constant 0 : i32
    %c0_i32_0 = arith.constant 0 : i32
    return %arg0, %c0_i32 : i32, i32
  }
  func.func @transform_1(%arg0: i32) -> (i32, i32) {
    %c0_i32 = arith.constant 0 : i32
    %c0_i32_0 = arith.constant 0 : i32
    return %arg0, %c0_i32 : i32, i32
  }
  func.func @transform_2(%arg0: i32) -> (i32, i32) {
    %c0_i32 = arith.constant 0 : i32
    %c0_i32_0 = arith.constant 0 : i32
    return %arg0, %c0_i32 : i32, i32
  }
}

</mosaic_0001>

<bundles_post_ra>
// kernel: tpu_custom_call.1
= control target key start
LH: loop header
LB: loop body
LE: loop exit
PB: predicated region body
PF: predicated region fallthrough
CT: control target
= control target key end

     0   :  { %vm14_vm0 = vcmask 130048   ;;  %v98_v2 = vmov 0   ;;  %v99_v3 = vmov 0.0   ;;  %s130_s0 = inlined_call_operand.vmem [shape: f32[8,16], index: 0, kind: input, shape index: {}]   ;;  %s131_s1 = inlined_call_operand.vmem [shape: f32[8,3], index: 1, kind: input, shape index: {}]   ;;  %s132_s2 = inlined_call_operand.hbm [shape: f32[8,18], index: 2, kind: output, shape index: {}]  }
   0x1   :  { %v25_v0 = vld [vmem:[%s131_s1] sm:$0xff]  ;;  %73 = vset.pattern.permute.xlu1 %v98_v2  ;;  %13 = vst [vmem:[#allocation2] sm:$0xff] %v99_v3 }
   0x2   :  { %v12_v1 = vld [vmem:[%s130_s0] sm:$0xff] }
   0x3   :  { %7 = vsyncpa [#allocation4], 0  ;;  %28 = vperm.xlu1 %73, %v25_v0   ;;  %15 = vst.msk [vmem:[#allocation2] sm:$0xff] %vm14_vm0, %v12_v1  ;;  %v100_v4 = vmov 2   ;;  %v101_v5 = vmov 1   ;;  %s102_s13 = smov 1   ;;  %v21_v7 = vlaneseq }
   0x4   :  { %75 = vset.pattern.permute.xlu0 %v100_v4  ;;  %s103_s1 = smov 111   ;;  %s104_s0 = smov 2   ;;  %vm49_vm2 = vcmask 146432  }
   0x5   :  { %v22_v8 = vand.u32 127, %v21_v7  ;;  %s105_s14 = smov [#allocation3]  }
   0x6   :  { %s57_s15 = sshll.u32 %s105_s14, 4  ;;  %s58_s15 = int_to_ptr.vmem [resolvable:$true] %s57_s15 }
   0x7   :  { %74 = vset.pattern.permute.xlu1 %v101_v5  ;;  %vm23_vm1 = vcmp.ge.s32.totalorder %v22_v8, 126  ;;  %s76_s16 = scalar_lea.vmem %s58_s15, 128  ;;  %p81_p1 = scmp.lt.s32.totalorder %s58_s15, %s58_s15 }
   0x8   :  { %35 = vperm.xlu1 %74, %v25_v0   ;;  %p77_p0 = scmp.ne.s32.totalorder %s58_s15, %s76_s16  ;;  %p82_p2 = scmp.lt.s32.totalorder %s76_s16, %s76_s16 }
   0xa   :  { %v16_v6 = vld [vmem:[#allocation2] sm:$0xff]  ;;  %p83_p3 = por %p82_p2, %p81_p1 }
   0xb   :  { %17 = vrot.lane.b32.xlu0 %v16_v6, %s102_s13 }
   0xc   :  { %p84_p4 = pnand %p83_p3, %p77_p0 }
   0xf   :  { %19 = vrot.lane.b32.xlu0 %v16_v6, %s103_s1 }
  0x13   :  { %43 = vperm.xlu0 %75, %v25_v0  }
  0x7d   :  { %v18_v9 = vpop.permute.xlu0 %17 }
  0x7e   :  { %v29_v12 = vpop.permute.xlu1 %28 }
  0x81   :  { %v20_v10 = vpop.permute.xlu0 %19 }
  0x82   :  { %v24_v11 = vsel %vm23_vm1, %v20_v10, %v18_v9 }
  0x83   :  { %32 = vrot.lane.b32.xlu1 %v24_v11, %s102_s13  ;;  %v36_v13 = vpop.permute.xlu1 %35  ;;  %v31_v17 = vmul.f32 %v29_v12, %v24_v11 }
  0x87   :  { %40 = vrot.lane.b32.xlu1 %v24_v11, %s104_s0 }
  0x8e   :  { %v44_v16 = vpop.permute.xlu0 %43 }
  0xf5   :  { %v33_v14 = vpop.permute.xlu1 %32 }
  0xf6   :  { %v38_v15 = vmul.f32 %v36_v13, %v33_v14 }
  0xf8   :  { %v39_v19 = vadd.f32 %v38_v15, %v31_v17 }
  0xf9   :  { %v41_v18 = vpop.permute.xlu1 %40 }
  0xfa   :  { %v46_v20 = vmul.f32 %v44_v16, %v41_v18 }
  0xfc   :  { %v47_v21 = vadd.f32 %v46_v20, %v39_v19 }
  0xfe   :  { %v48_v22 = vmax.f32 %v47_v21, 0.0 }
 0x100   :  { %50 = vst.msk [vmem:[#allocation3] sm:$0xff] %vm49_vm2, %v48_v22 }
 0x101   :  { %87 = shalt.err (!%p84_p4)
}
 0x102   :  { %60 = dma.vmem_to_hbm [thread:$0]  %s58_s15, 128, %s132_s2, [#allocation4]  }
 0x103   :  { %96 = dma.done.wait [#allocation4], 128  }
 0x104   :  { %97 = vsyncadd [#allocation4], 4294967168 }
 0x105   :  { %64 = vsyncpa [#allocation4], 1 }

</bundles_post_ra>
